<compile_context>
chip_gen: v7x
topology: tpu7x:2x2x1
jax: 0.10.0
libtpu: 0.0.40
codegen_flags: <defaults>
</compile_context>

<pallas_src>
import functools

import jax
import jax.numpy as jnp
from jax import lax
from jax.experimental import pallas as pl
from jax.experimental.pallas import tpu as pltpu


ROW_TP = 0
ROW_SUPPORT = 1
ROW_TOP1 = 2
ROW_TOP3 = 3
ROW_TOP5 = 4
ROW_PRED = 5
NUM_STATS = 8  # padded to a full sublane tile

# Per-tile VMEM budget for one logits block; with ~6 live (tn, C) f32
# temporaries plus double-buffered inputs this stays well inside the scoped
# VMEM limit on every generation (including v7x's 64 MiB physical VMEM).
_TILE_BUDGET_BYTES = 512 * 1024
_MAX_TILE_N = 1024
_NUM_CORES = 2  # leading "parallel" grid axis (v7x has 2 TCs per chip)


def _round_up(x, m):
    return (x + m - 1) // m * m


def _metric_stats_kernel(logits_ref, label_ref, out_ref):
    """Accumulates per-class confusion / top-k statistics over batch tiles."""
    j = pl.program_id(1)

    @pl.when(j == 0)
    def _():
        out_ref[...] = jnp.zeros_like(out_ref)

    logits = logits_ref[...].astype(jnp.float32)      # (tn, C)
    labels = label_ref[...].astype(jnp.int32)         # (tn, 1); -1 == padded row
    tn, c = logits.shape

    valid = (labels >= 0).astype(jnp.float32)         # (tn, 1)

    class_ids = lax.broadcasted_iota(jnp.int32, (tn, c), 1)
    onehot_label = (class_ids == labels).astype(jnp.float32)   # zero rows for pad

    # argmax prediction with first-max tie breaking (matches torch.argmax).
    max_logit = jnp.max(logits, axis=-1, keepdims=True)
    first_max = jnp.min(jnp.where(logits == max_logit, class_ids, c),
                        axis=-1, keepdims=True)                 # (tn, 1)
    onehot_pred = (class_ids == first_max).astype(jnp.float32)  # (tn, C)
    correct = (first_max == labels).astype(jnp.float32)         # (tn, 1)

    # top-k membership: rank of the true-label logit = #logits strictly greater.
    # TODO(synk): on exact logit ties at the k-th position this is slightly more
    # lenient than torch.topk's index-order tie break (top-1 uses argmax exactly).
    label_logit = jnp.sum(logits * onehot_label, axis=-1, keepdims=True)
    rank = jnp.sum((logits > label_logit).astype(jnp.float32),
                   axis=-1, keepdims=True)                      # (tn, 1)
    hit3 = (rank < 3.0).astype(jnp.float32)
    hit5 = (rank < 5.0).astype(jnp.float32)

    # Per-sample weight matrices (tn, NUM_STATS).  The batch reduction becomes
    # two small MXU matmuls contracting over the batch axis (no concatenate,
    # no axis-0 VPU reductions).  Padded rows have zero onehot_label, so only
    # the predicted-count row needs the explicit `valid` mask.
    col = lax.broadcasted_iota(jnp.int32, (tn, NUM_STATS), 1)
    w_label = (jnp.where(col == ROW_TP, correct, 0.0)
               + jnp.where(col == ROW_SUPPORT, 1.0, 0.0)
               + jnp.where(col == ROW_TOP1, correct, 0.0)
               + jnp.where(col == ROW_TOP3, hit3, 0.0)
               + jnp.where(col == ROW_TOP5, hit5, 0.0))
    w_pred = jnp.where(col == ROW_PRED, valid, 0.0)

    contract_batch = (((0,), (0,)), ((), ()))   # (tn, S) x (tn, C) -> (S, C)
    stats = lax.dot_general(w_label, onehot_label, contract_batch,
                            preferred_element_type=jnp.float32)
    stats += lax.dot_general(w_pred, onehot_pred, contract_batch,
                             preferred_element_type=jnp.float32)
    out_ref[...] += stats


@functools.partial(jax.jit, static_argnames=("tile_n", "num_cores"))
def _metric_stats_impl(logits, labels, *, tile_n, num_cores):
    n, c = logits.shape
    n_pad = _round_up(max(n, 1), tile_n * num_cores)
    pad = n_pad - n
    logits_p = jnp.pad(logits.astype(jnp.float32), ((0, pad), (0, 0)))
    labels_p = jnp.pad(labels.astype(jnp.int32), ((0, pad),),
                       constant_values=-1)
    labels_2d = labels_p.reshape(n_pad, 1)
    tiles_per_core = n_pad // (tile_n * num_cores)

    def row_map(p, j):
        return (p * tiles_per_core + j, 0)

    out = pl.pallas_call(
        _metric_stats_kernel,
        out_shape=jax.ShapeDtypeStruct((num_cores, NUM_STATS, c), jnp.float32),
        grid_spec=pltpu.PrefetchScalarGridSpec(
            num_scalar_prefetch=0,
            grid=(num_cores, tiles_per_core),
            in_specs=[
                pl.BlockSpec((tile_n, c), row_map),
                pl.BlockSpec((tile_n, 1), row_map),
            ],
            out_specs=pl.BlockSpec((None, NUM_STATS, c), lambda p, j: (p, 0, 0)),
        ),
        compiler_params=pltpu.CompilerParams(
            dimension_semantics=("parallel", "arbitrary"),
            vmem_limit_bytes=32 * 1024 * 1024),
    )(logits_p, labels_2d)
    return jnp.sum(out, axis=0)     # (NUM_STATS, C), per-core slabs summed


def metric_stats(logits, labels, *, tile_n=None, num_cores=_NUM_CORES):
    """Runs the Pallas kernel and returns the [NUM_STATS, C] stats table."""
    n, c = logits.shape
    if tile_n is None:
        budget_rows = max(8, (_TILE_BUDGET_BYTES // max(4 * c, 1)) // 8 * 8)
        tile_n = int(min(_MAX_TILE_N, budget_rows, _round_up(max(n, 1), 8)))
    # TODO(synk): for tiny class counts (C << 128) the lane axis is mostly
    # empty; a lane-dense sample packing would raise VPU/DMA utilization.
    return _metric_stats_impl(logits, labels, tile_n=tile_n,
                              num_cores=num_cores)


def _safe_div(num, den):
    return jnp.where(den > 0, num / jnp.where(den > 0, den, 1.0), 0.0)


@jax.jit
def _macro_metrics(stats):
    """[acc, top1, top3, top5, precision, recall, f1] from the stats table."""
    tp = stats[ROW_TP]
    support = stats[ROW_SUPPORT]
    top1 = stats[ROW_TOP1]
    top3 = stats[ROW_TOP3]
    top5 = stats[ROW_TOP5]
    pred_count = stats[ROW_PRED]
    fp = pred_count - tp
    fn = support - tp
    prec_c = _safe_div(tp, tp + fp)
    rec_c = _safe_div(tp, tp + fn)
    f1_c = _safe_div(2.0 * prec_c * rec_c, prec_c + rec_c)
    return jnp.stack([
        jnp.mean(_safe_div(tp, support)),     # macro accuracy == macro recall
        jnp.mean(_safe_div(top1, support)),
        jnp.mean(_safe_div(top3, support)),
        jnp.mean(_safe_div(top5, support)),
        jnp.mean(prec_c),
        jnp.mean(rec_c),
        jnp.mean(f1_c),
    ])


class Metric:
    """JAX/Pallas port of the PyTorch Metric module (multiclass, macro avg)."""

    def __init__(self, classes=8, average="macro"):
        self.acc = 0.0
        self.top1_acc = 0.0
        self.top3_acc = 0.0
        self.top5_acc = 0.0
        self.precision = 0.0
        self.recall = 0.0
        self.f1_score = 0.0
        self.classes = classes
        if classes == 2:
            self.task = "binary"
        elif classes < 512:
            self.task = "multiclass"
        else:
            self.task = "multilabel"
        self.epoch = 0
        self.average = average
        self.num_labels = self.classes
        # TODO(synk): torchmetrics binary (classes==2, sigmoid logits) and
        # multilabel (classes>=512) task paths are not implemented; this port
        # covers the multiclass / macro path.

    def forward(self, logits, label):
        logits = jnp.asarray(logits, dtype=jnp.float32)
        label = jnp.asarray(label, dtype=jnp.int32)
        stats = metric_stats(logits, label)
        # Single device->host transfer for all seven scalars.
        vals = [float(v) for v in jax.device_get(_macro_metrics(stats))]
        acc, top1, top3, top5, prec, rec, f1 = vals
        self.acc = acc
        self.top1_acc = top1
        self.precision = prec
        self.recall = rec
        self.f1_score = f1
        if self.task != "binary":
            self.top3_acc = top3
            self.top5_acc = top5

    __call__ = forward

    def show_states(self):
        results = (f"Epoch: {self.epoch + 1}, Accuracy: {self.acc}, "
                   f"Precision: {self.precision}, Recall: {self.recall}, "
                   f"F1-Score: {self.f1_score}")
        if self.task == "multiclass":
            results += (f"\t Top3_Accuracy: {self.top3_acc}, "
                        f"Top5_Accuracy: {self.top5_acc}")
        print(results + "\n", flush=True)


def _reference_stats(logits, labels):
    """Pure-JAX reference for the kernel's stats table (sanity check)."""
    n, c = logits.shape
    onehot_label = jax.nn.one_hot(labels, c, dtype=jnp.float32)
    pred = jnp.argmax(logits, axis=-1)
    onehot_pred = jax.nn.one_hot(pred, c, dtype=jnp.float32)
    tp = jnp.sum(onehot_pred * onehot_label, axis=0)
    support = jnp.sum(onehot_label, axis=0)
    pred_count = jnp.sum(onehot_pred, axis=0)
    label_logit = jnp.sum(logits * onehot_label, axis=-1, keepdims=True)
    rank = jnp.sum((logits > label_logit).astype(jnp.float32), axis=-1,
                   keepdims=True)
    top3 = jnp.sum(onehot_label * (rank < 3), axis=0)
    top5 = jnp.sum(onehot_label * (rank < 5), axis=0)
    z = jnp.zeros_like(tp)
    return jnp.stack([tp, support, tp, top3, top5, pred_count, z, z], axis=0)


if __name__ == "__main__":
    key = jax.random.PRNGKey(0)
    k1, k2, k3, k4 = jax.random.split(key, 4)

    # Small multiclass example: 16 samples, 8 classes.
    N, C = 16, 8
    logits = jax.random.normal(k1, (N, C), dtype=jnp.float32)
    labels = jax.random.randint(k2, (N,), 0, C, dtype=jnp.int32)

    stats = jax.block_until_ready(metric_stats(logits, labels))
    ref = _reference_stats(logits, labels)
    assert jnp.allclose(stats, ref), "kernel stats mismatch vs JAX reference"

    # Ragged batch (exercises the padding / -1-label masking path).
    N2 = 13
    logits2 = jax.random.normal(k3, (N2, C), dtype=jnp.float32)
    labels2 = jax.random.randint(k4, (N2,), 0, C, dtype=jnp.int32)
    stats2 = jax.block_until_ready(metric_stats(logits2, labels2))
    ref2 = _reference_stats(logits2, labels2)
    assert jnp.allclose(stats2, ref2), "kernel stats mismatch (padded batch)"

    metric = Metric(classes=C, average="macro")
    metric(logits, labels)
    checks = (metric.acc, metric.top1_acc, metric.precision, metric.recall,
              metric.f1_score, metric.top3_acc, metric.top5_acc)
    assert all(0.0 <= v <= 1.0 for v in checks)

    print("KERNEL_OK")
</pallas_src>

<mosaic_0001>
module attributes {stable_mosaic.version = 11 : i64} {
  func.func @_metric_stats_kernel(%arg0: i32, %arg1: i32, %arg2: memref<16x8xf32, #tpu.memory_space<vmem>>, %arg3: memref<16x1xi32, #tpu.memory_space<vmem>>, %arg4: memref<1x8x8xf32, #tpu.memory_space<vmem>>) attributes {dimension_semantics = [#tpu.dimension_semantics<parallel>, #tpu.dimension_semantics<arbitrary>], iteration_bounds = array<i64: 2, 1>, scalar_prefetch = 0 : i64, scratch_operands = 0 : i64, tpu.core_type = #tpu.core_type<tc>, window_params = [{transform_indices = @transform_0, window_bounds = array<i64: 16, 8>}, {transform_indices = @transform_1, window_bounds = array<i64: 16, 1>}, {transform_indices = @transform_2, window_bounds = array<i64: 1, 8, 8>}]} {
    %c0_i32 = arith.constant 0 : i32
    %0 = arith.cmpi eq, %arg1, %c0_i32 : i32
    %1 = arith.extui %0 : i1 to i32
    %c0_i32_0 = arith.constant 0 : i32
    %2 = arith.cmpi ne, %1, %c0_i32_0 : i32
    scf.if %2 {
      %cst_26 = arith.constant 0.000000e+00 : f32
      %95 = vector.broadcast %cst_26 : f32 to vector<8x8xf32>
      %c0_27 = arith.constant 0 : index
      %c0_28 = arith.constant 0 : index
      %c0_29 = arith.constant 0 : index
      %96 = vector.load %arg4[%c0_27, %c0_28, %c0_29] : memref<1x8x8xf32, #tpu.memory_space<vmem>>, vector<1x8x8xf32>
      %97 = vector.shape_cast %96 : vector<1x8x8xf32> to vector<8x8xf32>
      %98 = vector.shape_cast %95 : vector<8x8xf32> to vector<1x8x8xf32>
      tpu.vector_store %arg4[%c0_27, %c0_28, %c0_29], %98 {strides = array<i32>} : memref<1x8x8xf32, #tpu.memory_space<vmem>>, vector<1x8x8xf32>,
    } else {
    }
    %c0 = arith.constant 0 : index
    %c0_1 = arith.constant 0 : index
    %3 = vector.load %arg2[%c0, %c0_1] : memref<16x8xf32, #tpu.memory_space<vmem>>, vector<16x8xf32>
    %c0_2 = arith.constant 0 : index
    %c0_3 = arith.constant 0 : index
    %4 = vector.load %arg3[%c0_2, %c0_3] : memref<16x1xi32, #tpu.memory_space<vmem>>, vector<16x1xi32>
    %c0_i32_4 = arith.constant 0 : i32
    %5 = vector.broadcast %c0_i32_4 : i32 to vector<16x1xi32>
    %6 = arith.cmpi sge, %4, %5 : vector<16x1xi32>
    %7 = arith.extui %6 : vector<16x1xi1> to vector<16x1xi32>
    %8 = arith.sitofp %7 : vector<16x1xi32> to vector<16x1xf32>
    %9 = tpu.iota {dimensions = array<i32: 1>} : vector<16x8xi32>
    %10 = vector.broadcast %4 : vector<16x1xi32> to vector<16x8xi32>
    %11 = arith.cmpi eq, %9, %10 : vector<16x8xi32>
    %12 = arith.extui %11 : vector<16x8xi1> to vector<16x8xi32>
    %13 = arith.sitofp %12 : vector<16x8xi32> to vector<16x8xf32>
    %cst = arith.constant dense<0xFF800000> : vector<16xf32>
    %14 = vector.multi_reduction <maximumf>, %3, %cst [1] : vector<16x8xf32> to vector<16xf32>
    %15 = vector.shape_cast %14 : vector<16xf32> to vector<16x1xf32>
    %16 = vector.broadcast %15 : vector<16x1xf32> to vector<16x8xf32>
    %17 = arith.cmpf oeq, %3, %16 : vector<16x8xf32>
    %c8_i32 = arith.constant 8 : i32
    %18 = vector.broadcast %c8_i32 : i32 to vector<16x8xi32>
    %19 = arith.select %17, %9, %18 : vector<16x8xi1>, vector<16x8xi32>
    %cst_5 = arith.constant dense<2147483647> : vector<16xi32>
    %20 = vector.multi_reduction <minsi>, %19, %cst_5 [1] : vector<16x8xi32> to vector<16xi32>
    %21 = vector.shape_cast %20 : vector<16xi32> to vector<16x1xi32>
    %22 = vector.broadcast %21 : vector<16x1xi32> to vector<16x8xi32>
    %23 = arith.cmpi eq, %9, %22 : vector<16x8xi32>
    %24 = arith.extui %23 : vector<16x8xi1> to vector<16x8xi32>
    %25 = arith.sitofp %24 : vector<16x8xi32> to vector<16x8xf32>
    %26 = arith.cmpi eq, %21, %4 : vector<16x1xi32>
    %27 = arith.extui %26 : vector<16x1xi1> to vector<16x1xi32>
    %28 = arith.sitofp %27 : vector<16x1xi32> to vector<16x1xf32>
    %29 = arith.mulf %3, %13 : vector<16x8xf32>
    %cst_6 = arith.constant dense<0.000000e+00> : vector<16xf32>
    %30 = vector.multi_reduction <add>, %29, %cst_6 [1] : vector<16x8xf32> to vector<16xf32>
    %31 = vector.shape_cast %30 : vector<16xf32> to vector<16x1xf32>
    %32 = vector.broadcast %31 : vector<16x1xf32> to vector<16x8xf32>
    %33 = arith.cmpf ogt, %3, %32 : vector<16x8xf32>
    %34 = arith.extui %33 : vector<16x8xi1> to vector<16x8xi32>
    %35 = arith.sitofp %34 : vector<16x8xi32> to vector<16x8xf32>
    %cst_7 = arith.constant dense<0.000000e+00> : vector<16xf32>
    %36 = vector.multi_reduction <add>, %35, %cst_7 [1] : vector<16x8xf32> to vector<16xf32>
    %37 = vector.shape_cast %36 : vector<16xf32> to vector<16x1xf32>
    %cst_8 = arith.constant 3.000000e+00 : f32
    %38 = vector.broadcast %cst_8 : f32 to vector<16x1xf32>
    %39 = arith.cmpf olt, %37, %38 : vector<16x1xf32>
    %40 = arith.extui %39 : vector<16x1xi1> to vector<16x1xi32>
    %41 = arith.sitofp %40 : vector<16x1xi32> to vector<16x1xf32>
    %cst_9 = arith.constant 5.000000e+00 : f32
    %42 = vector.broadcast %cst_9 : f32 to vector<16x1xf32>
    %43 = arith.cmpf olt, %37, %42 : vector<16x1xf32>
    %44 = arith.extui %43 : vector<16x1xi1> to vector<16x1xi32>
    %45 = arith.sitofp %44 : vector<16x1xi32> to vector<16x1xf32>
    %46 = tpu.iota {dimensions = array<i32: 1>} : vector<16x8xi32>
    %c0_i32_10 = arith.constant 0 : i32
    %47 = vector.broadcast %c0_i32_10 : i32 to vector<16x8xi32>
    %48 = arith.cmpi eq, %46, %47 : vector<16x8xi32>
    %cst_11 = arith.constant 0.000000e+00 : f32
    %49 = vector.shape_cast %28 : vector<16x1xf32> to vector<16x1xf32>
    %50 = vector.broadcast %49 : vector<16x1xf32> to vector<16x8xf32>
    %51 = vector.broadcast %cst_11 : f32 to vector<16x8xf32>
    %52 = arith.select %48, %50, %51 : vector<16x8xi1>, vector<16x8xf32>
    %c1_i32 = arith.constant 1 : i32
    %53 = vector.broadcast %c1_i32 : i32 to vector<16x8xi32>
    %54 = arith.cmpi eq, %46, %53 : vector<16x8xi32>
    %cst_12 = arith.constant 1.000000e+00 : f32
    %cst_13 = arith.constant 0.000000e+00 : f32
    %55 = vector.broadcast %cst_12 : f32 to vector<16x8xf32>
    %56 = vector.broadcast %cst_13 : f32 to vector<16x8xf32>
    %57 = arith.select %54, %55, %56 : vector<16x8xi1>, vector<16x8xf32>
    %58 = arith.addf %52, %57 : vector<16x8xf32>
    %c2_i32 = arith.constant 2 : i32
    %59 = vector.broadcast %c2_i32 : i32 to vector<16x8xi32>
    %60 = arith.cmpi eq, %46, %59 : vector<16x8xi32>
    %cst_14 = arith.constant 0.000000e+00 : f32
    %61 = vector.shape_cast %28 : vector<16x1xf32> to vector<16x1xf32>
    %62 = vector.broadcast %61 : vector<16x1xf32> to vector<16x8xf32>
    %63 = vector.broadcast %cst_14 : f32 to vector<16x8xf32>
    %64 = arith.select %60, %62, %63 : vector<16x8xi1>, vector<16x8xf32>
    %65 = arith.addf %58, %64 : vector<16x8xf32>
    %c3_i32 = arith.constant 3 : i32
    %66 = vector.broadcast %c3_i32 : i32 to vector<16x8xi32>
    %67 = arith.cmpi eq, %46, %66 : vector<16x8xi32>
    %cst_15 = arith.constant 0.000000e+00 : f32
    %68 = vector.shape_cast %41 : vector<16x1xf32> to vector<16x1xf32>
    %69 = vector.broadcast %68 : vector<16x1xf32> to vector<16x8xf32>
    %70 = vector.broadcast %cst_15 : f32 to vector<16x8xf32>
    %71 = arith.select %67, %69, %70 : vector<16x8xi1>, vector<16x8xf32>
    %72 = arith.addf %65, %71 : vector<16x8xf32>
    %c4_i32 = arith.constant 4 : i32
    %73 = vector.broadcast %c4_i32 : i32 to vector<16x8xi32>
    %74 = arith.cmpi eq, %46, %73 : vector<16x8xi32>
    %cst_16 = arith.constant 0.000000e+00 : f32
    %75 = vector.shape_cast %45 : vector<16x1xf32> to vector<16x1xf32>
    %76 = vector.broadcast %75 : vector<16x1xf32> to vector<16x8xf32>
    %77 = vector.broadcast %cst_16 : f32 to vector<16x8xf32>
    %78 = arith.select %74, %76, %77 : vector<16x8xi1>, vector<16x8xf32>
    %79 = arith.addf %72, %78 : vector<16x8xf32>
    %c5_i32 = arith.constant 5 : i32
    %80 = vector.broadcast %c5_i32 : i32 to vector<16x8xi32>
    %81 = arith.cmpi eq, %46, %80 : vector<16x8xi32>
    %cst_17 = arith.constant 0.000000e+00 : f32
    %82 = vector.shape_cast %8 : vector<16x1xf32> to vector<16x1xf32>
    %83 = vector.broadcast %82 : vector<16x1xf32> to vector<16x8xf32>
    %84 = vector.broadcast %cst_17 : f32 to vector<16x8xf32>
    %85 = arith.select %81, %83, %84 : vector<16x8xi1>, vector<16x8xf32>
    %cst_18 = arith.constant dense<0.000000e+00> : vector<8x8xf32>
    %86 = tpu.matmul %79, %13, %cst_18 {dimension_numbers = #tpu.dot_dimension_numbers<[0], [0], [1], [1], [0, 1, 1, 1], [], []>} : vector<16x8xf32>, vector<16x8xf32>, vector<8x8xf32> -> vector<8x8xf32>
    %cst_19 = arith.constant dense<0.000000e+00> : vector<8x8xf32>
    %87 = tpu.matmul %85, %25, %cst_19 {dimension_numbers = #tpu.dot_dimension_numbers<[0], [0], [1], [1], [0, 1, 1, 1], [], []>} : vector<16x8xf32>, vector<16x8xf32>, vector<8x8xf32> -> vector<8x8xf32>
    %88 = arith.addf %86, %87 : vector<8x8xf32>
    %c0_20 = arith.constant 0 : index
    %c0_21 = arith.constant 0 : index
    %c0_22 = arith.constant 0 : index
    %89 = vector.load %arg4[%c0_20, %c0_21, %c0_22] : memref<1x8x8xf32, #tpu.memory_space<vmem>>, vector<1x8x8xf32>
    %90 = vector.shape_cast %89 : vector<1x8x8xf32> to vector<8x8xf32>
    %91 = arith.addf %90, %88 : vector<8x8xf32>
    %c0_23 = arith.constant 0 : index
    %c0_24 = arith.constant 0 : index
    %c0_25 = arith.constant 0 : index
    %92 = vector.load %arg4[%c0_23, %c0_24, %c0_25] : memref<1x8x8xf32, #tpu.memory_space<vmem>>, vector<1x8x8xf32>
    %93 = vector.shape_cast %92 : vector<1x8x8xf32> to vector<8x8xf32>
    %94 = vector.shape_cast %91 : vector<8x8xf32> to vector<1x8x8xf32>
    tpu.vector_store %arg4[%c0_23, %c0_24, %c0_25], %94 {strides = array<i32>} : memref<1x8x8xf32, #tpu.memory_space<vmem>>, vector<1x8x8xf32>,
    return
  }
  func.func @transform_0(%arg0: i32, %arg1: i32) -> (i32, i32) {
    %c1_i32 = arith.constant 1 : i32
    %0 = arith.muli %arg0, %c1_i32 : i32
    %1 = arith.addi %0, %arg1 : i32
    %c0_i32 = arith.constant 0 : i32
    %c0_i32_0 = arith.constant 0 : i32
    return %1, %c0_i32 : i32, i32
  }
  func.func @transform_1(%arg0: i32, %arg1: i32) -> (i32, i32) {
    %c1_i32 = arith.constant 1 : i32
    %0 = arith.muli %arg0, %c1_i32 : i32
    %1 = arith.addi %0, %arg1 : i32
    %c0_i32 = arith.constant 0 : i32
    %c0_i32_0 = arith.constant 0 : i32
    return %1, %c0_i32 : i32, i32
  }
  func.func @transform_2(%arg0: i32, %arg1: i32) -> (i32, i32, i32) {
    %c0_i32 = arith.constant 0 : i32
    %c0_i32_0 = arith.constant 0 : i32
    %c0_i32_1 = arith.constant 0 : i32
    return %arg0, %c0_i32, %c0_i32_0 : i32, i32, i32
  }
}

</mosaic_0001>

<bundles_post_ra>
// kernel: _metric_stats_impl.1
= control target key start
LH: loop header
LB: loop body
LE: loop exit
PB: predicated region body
PF: predicated region fallthrough
CT: control target
= control target key end

     0   :  { %s772_s9 = smov 0   ;;  %s774_s10 = smov 0   ;;  %s890_s0 = inlined_call_operand.vmem [shape: f32[32,8], index: 0, kind: input, shape index: {}]   ;;  %s891_s1 = inlined_call_operand.vmem [shape: s32[32,1], index: 1, kind: input, shape index: {}]   ;;  %s892_s2 = inlined_call_operand.vmem [shape: f32[2,8,8], index: 2, kind: output, shape index: {}]  }
   0x1   :  { %s776_s11 = smov 0  }
   0x2 LB: > { %s24_s12 = sadd.s32 1, %s746_s10  ;;  %p643_p0 = scmp.ge.s32.totalorder %s750_s11, 1  ;;  %s750_s11 = sphi %s776_s11, %s12_s11   ;;  %s746_s10 = sphi %s774_s10, %s894_s10   ;;  %s742_s9 = sphi %s772_s9, %s893_s9  }
   0x3   : > { %p26_p1 = scmp.ge.s32.totalorder %s24_s12, 2  ;;  %p144_p2 = scmp.lt.s32.totalorder %s750_s11, 3 }
   0x5   : > { %s896_s12 = smov (%p26_p1, %s24_s12), 0  ;;  %p145_p3 = pnand %p643_p0, %p144_p2 }
   0x6   : > { %s644_s13 = sshll.u32 (!%p145_p3), %s742_s9, 1  ;;  %vm196_vm0 = vcmask (!%p145_p3), 64512   ;;  %v752_v4 = vmov (!%p145_p3), 0   ;;  %v208_v5 = vlaneseq (!%p145_p3)  ;;  %v753_v19 = vmov (!%p145_p3), 0.0|0.0   ;;  %p188_p5 = scmp.lt.s32.totalorder (!%p145_p3), %s742_s9, 1 }
   0x7   : > { %148 = sbr.rel (%p145_p3) target bundleno = 973 (0x3cd), region = 28  ;;  %p174_p4 = scmp.lt.s32.totalorder (!%p145_p3), %s644_s13, 3  ;;  %726 = vset.pattern.permute.xlu1 (!%p145_p3), %v752_v4  ;;  %727 = vset.pattern.permute.xlu0 (!%p145_p3), %v752_v4  ;;  %v754_v25 = vmov (!%p145_p3), 0.0   ;;  %v755_v32 = vmov (!%p145_p3), 1.0|1.0  }
   0x8   : > { %v807_v6 = vand.u32 (!%p145_p3), 127, %v208_v5  ;;  %694 = vmatprep.subr.bf16.mxu1 (!%p145_p3), %v753_v19  ;;  %691 = vmatprep.subr.bf16.mxu0 (!%p145_p3), %v753_v19 }
   0xe   : > { %s898_s13 = smov (!%p174_p4, %s644_s13), 3  ;;  %s900_s9 = smov (!%p188_p5, %s742_s9), 1 }
   0xf   : > { %s645_s14 = sshll.u32 %s898_s13, 3  ;;  %s648_s21 = sshll.u32 %s900_s9, 3 }
  0x10   : > { %s177_s17 = scalar_lea.vmem %s890_s0, %s645_s14  ;;  %s185_s20 = scalar_lea.vmem %s891_s1, %s645_s14 }
  0x11   : > { %v799_v0 = vld [vmem:[%s177_s17] sm:$0xff]  ;;  %v801_v1 = vld [vmem:[%s177_s17 + $0x8] sm:$0xff]  ;;  %s191_s24 = scalar_lea.vmem %s892_s2, %s648_s21 }
  0x12   : > { %v223_v2 = vsel %vm196_vm0, %v799_v0, -inf  ;;  %v226_v3 = vsel %vm196_vm0, %v801_v1, -inf  ;;  %v818_v17 = vld [vmem:[%s185_s20] sm:$0xff]  ;;  %v821_v18 = vld [vmem:[%s185_s20 + $0x8] sm:$0xff]  ;;  %197 = vst.msk [vmem:[%s191_s24] sm:$0xff] %vm196_vm0, %v754_v25 }
  0x13   : > { %224 = vmax.xlane.f32.xlu0 %v223_v2  ;;  %vm202_vm15 = vcmp.ge.s32.totalorder %v818_v17, 0 }
  0x14   : > { %v649_v56 = vsel %vm202_vm15, 1.0, %v754_v25 }
  0x17   : > { %227 = vmax.xlane.f32.xlu0 %v226_v3 }
  0xa0   : > { %v225_v7 = vpop.xlane.xlu0 %224 }
  0xa1   : > { %vm229_vm1 = vcmp.eq.f32.partialorder %v799_v0, %v225_v7 }
  0xa2   : > { %v231_v8 = vsel %vm229_vm1, %v807_v6, 8  ;;  %vm203_vm1 = vcmp.ge.s32.totalorder %v821_v18, 0 }
  0xa3   : > { %v233_v9 = vsel %vm196_vm0, %v231_v8, 2147483647  ;;  %v650_v57 = vsel %vm203_vm1, 1.0, %v754_v25 }
  0xa4   : > { %v228_v10 = vpop.xlane.xlu0 %227  ;;  %v235_v11 = vshra.s32 %v233_v9, 16  ;;  %v234_v20 = vand.u32 65535, %v233_v9 }
  0xa5   : > { %vm230_vm2 = vcmp.eq.f32.partialorder %v801_v1, %v228_v10 }
  0xa6   : > { %v232_v12 = vsel %vm230_vm2, %v807_v6, 8  ;;  %v237_v13 = vcvt.s32.f32 %v235_v11  ;;  %v236_v22 = vcvt.s32.f32 %v234_v20  ;;  %vm756_vm2 = vmmov 0  }
  0xa7   : > { %v248_v14 = vsel %vm196_vm0, %v232_v12, 2147483647  ;;  %681 = vmatprep.mubr.msk.f32.mxu0 %vm756_vm2, %v754_v25  ;;  %688 = vmatprep.mubr.msk.f32.mxu1 %vm756_vm2, %v754_v25 }
  0xa8   : > { %238 = vmin.xlane.f32.xlu1 %v237_v13  ;;  %v250_v15 = vshra.s32 %v248_v14, 16  ;;  %v249_v34 = vand.u32 65535, %v248_v14 }
  0xaa   : > { %v252_v16 = vcvt.s32.f32 %v250_v15  ;;  %v251_v36 = vcvt.s32.f32 %v249_v34 }
  0xac   : > { %253 = vmin.xlane.f32.xlu0 %v252_v16 }
  0xb9   : > { %211 = vperm.xlu1 %726, %v818_v17  }
  0xc2   : > { %214 = vperm.xlu0 %727, %v821_v18  }
 0x135   : > { %v239_v21 = vpop.xlane.xlu1 %238 }
 0x136   : > { %vm240_vm3 = vcmp.eq.f32.partialorder %v237_v13, %v239_v21  ;;  %v245_v42 = vcvt.f32.s32 %v239_v21 }
 0x137   : > { %v241_v23 = vsel %vm240_vm3, %v236_v22, inf  ;;  %vm307_vm3 = vcmp.eq.s32.totalorder %v807_v6, 0 }
 0x138   : > { %242 = vmin.xlane.f32.xlu0 %v241_v23  ;;  %v246_v47 = vshll.u32 %v245_v42, 16 }
 0x139   : > { %v212_v24 = vpop.permute.xlu1 %211  ;;  %v254_v28 = vpop.xlane.xlu0 %253 }
 0x13a   : > { %vm216_vm4 = vcmp.eq.s32.totalorder %v807_v6, %v212_v24  ;;  %vm255_vm7 = vcmp.eq.f32.partialorder %v252_v16, %v254_v28  ;;  %v260_v44 = vcvt.f32.s32 %v254_v28 }
 0x13b   : > { %v651_v26 = vsel %vm216_vm4, 1.0, %v754_v25  ;;  %v256_v37 = vsel %vm255_vm7, %v251_v36, inf  ;;  %vm324_vm7 = vcmp.eq.s32.totalorder %v807_v6, 2 }
 0x13c   : > { %v275_v27 = vmul.f32 %v651_v26, %v799_v0  ;;  %v261_v50 = vshll.u32 %v260_v44, 16 }
 0x13e   : > { %v277_v29 = vsel %vm196_vm0, %v275_v27, 0.0 }
 0x13f   : > { %278 = vadd.xlane.f32.xlu1 %v277_v29  ;;  %v563_v29 = vld [vmem:[%s191_s24] sm:$0xff] }
 0x141   : > { %v215_v30 = vpop.permute.xlu0 %214 }
 0x142   : > { %vm217_vm5 = vcmp.eq.s32.totalorder %v807_v6, %v215_v30 }
 0x143   : > { %v652_v31 = vsel %vm217_vm5, 1.0, %v754_v25  ;;  %vm695_vm6 = vmpackc.low %vm217_vm5, %vm216_vm4  ;;  %vm320_vm4 = vcmp.eq.s32.totalorder %v807_v6, 1 }
 0x144   : > { %696 = vmatpush3.bf16.msk.msra.mxu1 %vm695_vm6, %v755_v32  ;;  %v276_v33 = vmul.f32 %v652_v31, %v801_v1  ;;  %v321_v61 = vsel %vm320_vm4, 1.0, %v754_v25 }
 0x146   : > { %v280_v35 = vsel %vm196_vm0, %v276_v33, 0.0 }
 0x147   : > { %281 = vadd.xlane.f32.xlu1 %v280_v35 }
 0x14b   : > { %257 = vmin.xlane.f32.xlu1 %v256_v37 }
 0x1c5   : > { %v243_v41 = vpop.xlane.xlu0 %242 }
 0x1c6   : > { %v244_v45 = vcvt.f32.s32 %v243_v41 }
 0x1c8   : > { %v247_v51 = vadd.s32 %v246_v47, %v244_v45 }
 0x1ca   : > { %vm263_vm11 = vcmp.eq.s32.totalorder %v807_v6, %v247_v51  ;;  %vm269_vm14 = vcmp.eq.s32.totalorder %v247_v51, %v818_v17 }
 0x1cb   : > { %v655_v55 = vsel %vm269_vm14, 1.0, %v754_v25 }
 0x1cc   : > { %v279_v38 = vpop.xlane.xlu1 %278 }
 0x1cd   : > { %vm283_vm8 = vcmp.gt.f32.partialorder %v799_v0, %v279_v38 }
 0x1ce   : > { %v657_v39 = vsel %vm283_vm8, 1.0, %v754_v25  ;;  %vm329_vm8 = vcmp.eq.s32.totalorder %v807_v6, 3 }
 0x1cf   : > { %v289_v40 = vsel %vm196_vm0, %v657_v39, 0.0 }
 0x1d0   : > { %290 = vadd.xlane.f32.xlu1 %v289_v40 }
 0x1d4   : > { %v282_v43 = vpop.xlane.xlu1 %281 }
 0x1d5   : > { %vm284_vm9 = vcmp.gt.f32.partialorder %v801_v1, %v282_v43 }
 0x1d6   : > { %v658_v46 = vsel %vm284_vm9, 1.0, %v754_v25 }
 0x1d7   : > { %v292_v48 = vsel %vm196_vm0, %v658_v46, 0.0 }
 0x1d8   : > { %293 = vadd.xlane.f32.xlu1 %v292_v48  ;;  %v258_v49 = vpop.xlane.xlu1 %257 }
 0x1d9   : > { %v259_v52 = vcvt.f32.s32 %v258_v49 }
 0x1db   : > { %v262_v53 = vadd.s32 %v261_v50, %v259_v52 }
 0x1dd   : > { %vm270_vm10 = vcmp.eq.s32.totalorder %v262_v53, %v821_v18  ;;  %vm264_vm12 = vcmp.eq.s32.totalorder %v807_v6, %v262_v53 }
 0x1de   : > { %v656_v54 = vsel %vm270_vm10, 1.0, %v754_v25  ;;  %vm692_vm13 = vmpackc.low %vm264_vm12, %vm263_vm11  ;;  %vm339_vm10 = vcmp.eq.s32.totalorder %v807_v6, 5  ;;  %vm334_vm11 = vcmp.eq.s32.totalorder %v807_v6, 4 }
 0x1df   : > { %315 = vperm.xlu0 %727, %v656_v54   ;;  %693 = vmatpush3.bf16.msk.msra.mxu0 %vm692_vm13, %v755_v32  ;;  %vm384_vm13 = vcmask 130048  }
 0x1e9   : > { %310 = vperm.xlu1 %726, %v655_v55  }
 0x1ed   : > { %342 = vperm.xlu1 %726, %v649_v56  }
 0x1f1   : > { %347 = vperm.xlu1 %726, %v650_v57  }
 0x25d   : > { %v291_v58 = vpop.xlane.xlu1 %290 }
 0x25e   : > { %v316_v59 = vpop.permute.xlu0 %315  ;;  %vm295_vm5 = vcmp.lt.f32.partialorder %v291_v58, 3.0  ;;  %vm301_vm9 = vcmp.lt.f32.partialorder %v291_v58, 5.0 }
 0x25f   : > { %v319_v62 = vsel %vm307_vm3, %v316_v59, 0.0  ;;  %v659_v2 = vsel %vm295_vm5, 1.0, %v754_v25  ;;  %v326_v7 = vsel %vm324_vm7, %v316_v59, 0.0  ;;  %v661_v8 = vsel %vm301_vm9, 1.0, %v754_v25 }
 0x260   : > { %v323_v1 = vadd.f32 %v321_v61, %v319_v62  ;;  %v330_v11 = vsel %vm329_vm8, %v659_v2, 0.0  ;;  %v335_v16 = vsel %vm334_vm11, %v661_v8, 0.0 }
 0x262   : > { %v328_v14 = vadd.f32 %v326_v7, %v323_v1 }
 0x265   : > { %v294_v60 = vpop.xlane.xlu1 %293 }
 0x266   : > { %vm296_vm6 = vcmp.lt.f32.partialorder %v294_v60, 3.0  ;;  %vm302_vm12 = vcmp.lt.f32.partialorder %v294_v60, 5.0 }
 0x267   : > { %v660_v3 = vsel %vm296_vm6, 1.0, %v754_v25  ;;  %v662_v17 = vsel %vm302_vm12, 1.0, %v754_v25 }
 0x268   : > { %v331_v12 = vsel %vm329_vm8, %v660_v3, 0.0  ;;  %v336_v22 = vsel %vm334_vm11, %v662_v17, 0.0 }
 0x269   : > { %v311_v63 = vpop.permute.xlu1 %310  ;;  %v333_v18 = vadd.f32 %v331_v12, %v328_v14 }
 0x26a   : > { %v318_v0 = vsel %vm307_vm3, %v311_v63, 0.0  ;;  %v325_v5 = vsel %vm324_vm7, %v311_v63, 0.0 }
 0x26b   : > { %v322_v4 = vadd.f32 %v321_v61, %v318_v0  ;;  %v338_v23 = vadd.f32 %v336_v22, %v333_v18 }
 0x26d   : > { %v327_v9 = vadd.f32 %v325_v5, %v322_v4  ;;  %v343_v10 = vpop.permute.xlu1 %342 }
 0x26e   : > { %v350_v13 = vsel %vm339_vm10, %v343_v10, 0.0 }
 0x26f   : > { %v332_v15 = vadd.f32 %v330_v11, %v327_v9  ;;  %352 = vxpose.xlu1.b32.start [1/2] (short) (narrow) %v350_v13, 8 }
 0x271   : > { %v348_v19 = vpop.permute.xlu1 %347  ;;  %v337_v20 = vadd.f32 %v335_v16, %v332_v15 }
 0x272   : > { %v351_v21 = vsel %vm339_vm10, %v348_v19, 0.0 }
 0x273   : > { %458 = vxpose.xlu0.b32.start [1/2] (short) (narrow) %v337_v20, 8  ;;  %353 = vxpose.xlu1.b32.end [2/2] (short) (narrow) %v351_v21, 8 }
 0x277   : > { %459 = vxpose.xlu0.b32.end [2/2] (short) (narrow) %v338_v23, 8 }
 0x2ef   : > { %v368_v24 = vpop.trf.xlu1 }
 0x2f0   : > { %682 = vmatmul.mubr.msk.f32.vlgmr.msra.gmra.mrb[0].mxu0 %vm384_vm13, %v368_v24 }
 0x2f3   : > { %v474_v26 = vpop.trf.xlu0 }
 0x2f4   : > { %689 = vmatmul.mubr.msk.f32.vlgmr.msra.gmra.mrb[0].mxu1 %vm384_vm13, %v474_v26 }
 0x3c3   : > { %v454_v27 = vpop.f32.mrb[0].mxu0 }
 0x3c4   : > { %v683_v6 = vpop.f32.mrb[1].mxu0 }
 0x3c7   : > { %v559_v28 = vpop.f32.mrb[0].mxu1 }
 0x3c8   : > { %v560_v30 = vadd.f32 %v559_v28, %v454_v27  ;;  %v690_v31 = vpop.f32.mrb[1].mxu1 }
 0x3ca   : > { %v564_v32 = vadd.f32 %v563_v29, %v560_v30 }
 0x3cc   : > { %565 = vst.msk [vmem:[%s191_s24] sm:$0xff] %vm196_vm0, %v564_v32 }
 0x3cd PF: > { %s12_s11 = sadd.s32 1, %s750_s11   ;;  %s893_s9 = smov %s746_s10 }
 0x3ce   : > { %p9_p6 = scmp.ge.s32.totalorder %s12_s11, 4   ;;  %s894_s10 = smov %s896_s12 }
 0x3d0   :  { %11 = sbr.rel (!%p9_p6) target bundleno = 2 (0x2), region = 65 }

</bundles_post_ra>
